<compile_context>
chip_gen: v7x
topology: tpu7x:2x2x1
jax: 0.10.0
libtpu: 0.0.40
codegen_flags: <defaults>
</compile_context>

<pallas_src>
import jax
import jax.numpy as jnp
from jax import lax
from jax.experimental import pallas as pl
from jax.experimental.pallas import tpu as pltpu

LANE = 128  # TPU lane width (last dim)


def _round_up(n, m):
    return ((n + m - 1) // m) * m


def dqn_mlp_kernel(x_ref, w1_ref, b1_ref, w2_ref, b2_ref, w3t_ref, b3t_ref, o_ref):
    # Cast the f32 input tile to the MXU operand dtype in-kernel (no wrapper copy).
    x = x_ref[...].astype(w1_ref.dtype)
    # Layer 1: Linear(in, 128) + ReLU   (bf16 MXU operands, f32 accumulation)
    h1 = jnp.dot(x, w1_ref[...], preferred_element_type=jnp.float32)
    h1 = jnp.maximum(h1 + b1_ref[...], 0.0)
    # Layer 2: Linear(128, 128) + ReLU
    h2 = jnp.dot(h1.astype(w2_ref.dtype), w2_ref[...],
                 preferred_element_type=jnp.float32)
    h2 = jnp.maximum(h2 + b2_ref[...], 0.0)
    # Layer 3, computed transposed: out^T (out_size, tm) = W3^T @ h2^T.
    # Contract the hidden dim of both operands (A @ B^T form, MXU-native).
    out_t = lax.dot_general(
        w3t_ref[...], h2.astype(w3t_ref.dtype),
        dimension_numbers=(((1,), (1,)), ((), ())),
        preferred_element_type=jnp.float32)
    o_ref[...] = (out_t + b3t_ref[...]).astype(o_ref.dtype)


def prepare_params(params, compute_dtype=jnp.bfloat16):
    """One-time conversion of (in,out)-layout f32 params to kernel layout/dtypes."""
    w1, b1, w2, b2, w3, b3 = params
    return (
        w1.astype(compute_dtype),                        # (in, 128)
        jnp.reshape(b1, (1, -1)).astype(jnp.float32),    # (1, 128)
        w2.astype(compute_dtype),                        # (128, 128)
        jnp.reshape(b2, (1, -1)).astype(jnp.float32),    # (1, 128)
        jnp.transpose(w3).astype(compute_dtype),         # (out, 128)  (transposed)
        jnp.reshape(b3, (-1, 1)).astype(jnp.float32),    # (out, 1)
    )


def dqn_forward(x, prepared_params, *, tile_m=2048):
    """DQNModel forward. x: (batch, in_size) f32 -> (batch, out_size) f32."""
    w1p, b1p, w2p, b2p, w3tp, b3tp = prepared_params
    batch, in_size = x.shape
    hidden = w1p.shape[1]
    out_size = w3tp.shape[0]

    tile_m = _round_up(max(tile_m, LANE), LANE)
    if batch <= tile_m:
        # Single grid step: no input copy, no row padding.
        tm, grid_m, batch_pad = batch, 1, batch
        xp = x
    else:
        tm = tile_m
        # Prefer >=4 grid steps (pipeline depth + work for both v7x TensorCores),
        # keeping tm a multiple of 128 so output stores stay lane-dense.
        while tm > LANE and pl.cdiv(batch, tm) < 4:
            tm = max(LANE, _round_up(tm // 2, LANE))
        grid_m = pl.cdiv(batch, tm)
        batch_pad = grid_m * tm
        xp = x if batch_pad == batch else jnp.pad(x, ((0, batch_pad - batch), (0, 0)))

    flops = 2 * batch_pad * hidden * (in_size + hidden + out_size)
    bytes_accessed = (
        batch_pad * in_size * 4
        + (w1p.size + w2p.size + w3tp.size) * w1p.dtype.itemsize
        + (b1p.size + b2p.size + b3tp.size) * 4
        + out_size * batch_pad * 4)

    out_t = pl.pallas_call(
        dqn_mlp_kernel,
        out_shape=jax.ShapeDtypeStruct((out_size, batch_pad), jnp.float32),
        grid=(grid_m,),
        in_specs=[
            # x: tiled over the batch, pipelined / double-buffered by BlockSpec.
            pl.BlockSpec((tm, in_size), lambda i: (i, 0)),
            # Weights & biases: constant index maps -> DMA'd once, VMEM-resident.
            pl.BlockSpec((in_size, hidden), lambda i: (0, 0)),
            pl.BlockSpec((1, hidden), lambda i: (0, 0)),
            pl.BlockSpec((hidden, hidden), lambda i: (0, 0)),
            pl.BlockSpec((1, hidden), lambda i: (0, 0)),
            pl.BlockSpec((out_size, hidden), lambda i: (0, 0)),
            pl.BlockSpec((out_size, 1), lambda i: (0, 0)),
        ],
        # Transposed output: lane dim = batch tile (lane-dense), only out_size rows.
        out_specs=pl.BlockSpec((out_size, tm), lambda i: (0, i)),
        compiler_params=pltpu.CompilerParams(
            dimension_semantics=("parallel",)),
        cost_estimate=pl.CostEstimate(
            flops=flops, transcendentals=0, bytes_accessed=bytes_accessed),
    )(xp, w1p, b1p, w2p, b2p, w3tp, b3tp)

    # (out_size, batch_pad) -> (batch, out_size); tiny array, cheap transpose.
    return out_t[:, :batch].T


def init_params(key, input_size, output_size, hidden=128):
    # PyTorch-style init: U(-1/sqrt(fan_in), 1/sqrt(fan_in)); weights stored (in, out).
    def linear(k, fan_in, fan_out):
        kw, kb = jax.random.split(k)
        bound = 1.0 / jnp.sqrt(fan_in)
        w = jax.random.uniform(kw, (fan_in, fan_out), jnp.float32, -bound, bound)
        b = jax.random.uniform(kb, (1, fan_out), jnp.float32, -bound, bound)
        return w, b

    k1, k2, k3 = jax.random.split(key, 3)
    w1, b1 = linear(k1, input_size, hidden)
    w2, b2 = linear(k2, hidden, hidden)
    w3, b3 = linear(k3, hidden, output_size)
    return (w1, b1, w2, b2, w3, b3)


def _reference(x, params, compute_dtype):
    """Plain-JAX reference with identical precision semantics (bf16 MXU, f32 acc)."""
    w1, b1, w2, b2, w3, b3 = params
    xc = x.astype(compute_dtype)
    h = jnp.dot(xc, w1.astype(compute_dtype), preferred_element_type=jnp.float32) + b1
    h = jnp.maximum(h, 0.0)
    h = jnp.dot(h.astype(compute_dtype), w2.astype(compute_dtype),
                preferred_element_type=jnp.float32) + b2
    h = jnp.maximum(h, 0.0)
    return jnp.dot(h.astype(compute_dtype), w3.astype(compute_dtype),
                   preferred_element_type=jnp.float32) + b3


if __name__ == "__main__":
    input_size = 32
    output_size = 4

    key = jax.random.PRNGKey(0)
    kx, kp, kx2 = jax.random.split(key, 3)
    params = init_params(kp, input_size, output_size)
    prepared = prepare_params(params)

    # Small online-inference batch: single grid step, no input copies.
    x_small = jax.random.normal(kx, (8, input_size), jnp.float32)
    out_small = dqn_forward(x_small, prepared)
    jax.block_until_ready(out_small)
    assert out_small.shape == (8, output_size)
    ref_small = _reference(x_small, params, jnp.bfloat16)
    assert jnp.allclose(out_small, ref_small, atol=2e-3, rtol=2e-3)

    # Multi-tile batch with a remainder: exercises grid>1 and the row-padding path.
    x_multi = jax.random.normal(kx2, (300, input_size), jnp.float32)
    out_multi = dqn_forward(x_multi, prepared, tile_m=128)
    jax.block_until_ready(out_multi)
    assert out_multi.shape == (300, output_size)
    ref_multi = _reference(x_multi, params, jnp.bfloat16)
    assert jnp.allclose(out_multi, ref_multi, atol=2e-3, rtol=2e-3)

    # Loose sanity check against the pure-f32 PyTorch-semantics forward.
    w1, b1, w2, b2, w3, b3 = params
    ref_f32 = jnp.maximum(x_small @ w1 + b1, 0.0)
    ref_f32 = jnp.maximum(ref_f32 @ w2 + b2, 0.0)
    ref_f32 = ref_f32 @ w3 + b3
    assert jnp.allclose(out_small, ref_f32, atol=5e-2, rtol=5e-2)

    print("KERNEL_OK")
</pallas_src>

<mosaic_0001>
module attributes {stable_mosaic.version = 11 : i64} {
  func.func @dqn_mlp_kernel(%arg0: i32, %arg1: memref<8x32xf32, #tpu.memory_space<vmem>>, %arg2: memref<32x128xbf16, #tpu.memory_space<vmem>>, %arg3: memref<1x128xf32, #tpu.memory_space<vmem>>, %arg4: memref<128x128xbf16, #tpu.memory_space<vmem>>, %arg5: memref<1x128xf32, #tpu.memory_space<vmem>>, %arg6: memref<4x128xbf16, #tpu.memory_space<vmem>>, %arg7: memref<4x1xf32, #tpu.memory_space<vmem>>, %arg8: memref<4x8xf32, #tpu.memory_space<vmem>>) attributes {dimension_semantics = [#tpu.dimension_semantics<parallel>], iteration_bounds = array<i64: 1>, scalar_prefetch = 0 : i64, scratch_operands = 0 : i64, tpu.core_type = #tpu.core_type<tc>, window_params = [{transform_indices = @transform_0, window_bounds = array<i64: 8, 32>}, {pipeline_mode = #tpu.pipeline_mode<synchronous>, transform_indices = @transform_1, window_bounds = array<i64: 32, 128>}, {pipeline_mode = #tpu.pipeline_mode<synchronous>, transform_indices = @transform_2, window_bounds = array<i64: 1, 128>}, {pipeline_mode = #tpu.pipeline_mode<synchronous>, transform_indices = @transform_3, window_bounds = array<i64: 128, 128>}, {pipeline_mode = #tpu.pipeline_mode<synchronous>, transform_indices = @transform_4, window_bounds = array<i64: 1, 128>}, {pipeline_mode = #tpu.pipeline_mode<synchronous>, transform_indices = @transform_5, window_bounds = array<i64: 4, 128>}, {pipeline_mode = #tpu.pipeline_mode<synchronous>, transform_indices = @transform_6, window_bounds = array<i64: 4, 1>}, {transform_indices = @transform_7, window_bounds = array<i64: 4, 8>}]} {
    %c0 = arith.constant 0 : index
    %c0_0 = arith.constant 0 : index
    %0 = vector.load %arg1[%c0, %c0_0] : memref<8x32xf32, #tpu.memory_space<vmem>>, vector<8x32xf32>
    %1 = arith.truncf %0 : vector<8x32xf32> to vector<8x32xbf16>
    %c0_1 = arith.constant 0 : index
    %c0_2 = arith.constant 0 : index
    %2 = vector.load %arg2[%c0_1, %c0_2] : memref<32x128xbf16, #tpu.memory_space<vmem>>, vector<32x128xbf16>
    %cst = arith.constant dense<0.000000e+00> : vector<8x128xf32>
    %3 = tpu.matmul %1, %2, %cst {dimension_numbers = #tpu.dot_dimension_numbers<[1], [0], [0], [1], [0, 0, 1, 1], [], []>} : vector<8x32xbf16>, vector<32x128xbf16>, vector<8x128xf32> -> vector<8x128xf32>
    %c0_3 = arith.constant 0 : index
    %c0_4 = arith.constant 0 : index
    %4 = vector.load %arg3[%c0_3, %c0_4] : memref<1x128xf32, #tpu.memory_space<vmem>>, vector<1x128xf32>
    %5 = vector.broadcast %4 : vector<1x128xf32> to vector<8x128xf32>
    %6 = arith.addf %3, %5 : vector<8x128xf32>
    %cst_5 = arith.constant 0.000000e+00 : f32
    %7 = vector.broadcast %cst_5 : f32 to vector<8x128xf32>
    %8 = arith.maximumf %6, %7 : vector<8x128xf32>
    %9 = arith.truncf %8 : vector<8x128xf32> to vector<8x128xbf16>
    %c0_6 = arith.constant 0 : index
    %c0_7 = arith.constant 0 : index
    %10 = vector.load %arg4[%c0_6, %c0_7] : memref<128x128xbf16, #tpu.memory_space<vmem>>, vector<128x128xbf16>
    %cst_8 = arith.constant dense<0.000000e+00> : vector<8x128xf32>
    %11 = tpu.matmul %9, %10, %cst_8 {dimension_numbers = #tpu.dot_dimension_numbers<[1], [0], [0], [1], [0, 0, 1, 1], [], []>} : vector<8x128xbf16>, vector<128x128xbf16>, vector<8x128xf32> -> vector<8x128xf32>
    %c0_9 = arith.constant 0 : index
    %c0_10 = arith.constant 0 : index
    %12 = vector.load %arg5[%c0_9, %c0_10] : memref<1x128xf32, #tpu.memory_space<vmem>>, vector<1x128xf32>
    %13 = vector.broadcast %12 : vector<1x128xf32> to vector<8x128xf32>
    %14 = arith.addf %11, %13 : vector<8x128xf32>
    %cst_11 = arith.constant 0.000000e+00 : f32
    %15 = vector.broadcast %cst_11 : f32 to vector<8x128xf32>
    %16 = arith.maximumf %14, %15 : vector<8x128xf32>
    %c0_12 = arith.constant 0 : index
    %c0_13 = arith.constant 0 : index
    %17 = vector.load %arg6[%c0_12, %c0_13] : memref<4x128xbf16, #tpu.memory_space<vmem>>, vector<4x128xbf16>
    %18 = arith.truncf %16 : vector<8x128xf32> to vector<8x128xbf16>
    %cst_14 = arith.constant dense<0.000000e+00> : vector<4x8xf32>
    %19 = tpu.matmul %17, %18, %cst_14 {dimension_numbers = #tpu.dot_dimension_numbers<[1], [1], [0], [0], [0, 0, 1, 0], [], []>} : vector<4x128xbf16>, vector<8x128xbf16>, vector<4x8xf32> -> vector<4x8xf32>
    %c0_15 = arith.constant 0 : index
    %c0_16 = arith.constant 0 : index
    %20 = vector.load %arg7[%c0_15, %c0_16] : memref<4x1xf32, #tpu.memory_space<vmem>>, vector<4x1xf32>
    %21 = vector.broadcast %20 : vector<4x1xf32> to vector<4x8xf32>
    %22 = arith.addf %19, %21 : vector<4x8xf32>
    %c0_17 = arith.constant 0 : index
    %c0_18 = arith.constant 0 : index
    %23 = vector.load %arg8[%c0_17, %c0_18] : memref<4x8xf32, #tpu.memory_space<vmem>>, vector<4x8xf32>
    tpu.vector_store %arg8[%c0_17, %c0_18], %22 {strides = array<i32>} : memref<4x8xf32, #tpu.memory_space<vmem>>, vector<4x8xf32>,
    return
  }
  func.func @transform_0(%arg0: i32) -> (i32, i32) {
    %c0_i32 = arith.constant 0 : i32
    %c0_i32_0 = arith.constant 0 : i32
    return %arg0, %c0_i32 : i32, i32
  }
  func.func @transform_1(%arg0: i32) -> (i32, i32) {
    %c0_i32 = arith.constant 0 : i32
    %c0_i32_0 = arith.constant 0 : i32
    %c0_i32_1 = arith.constant 0 : i32
    return %c0_i32, %c0_i32_0 : i32, i32
  }
  func.func @transform_2(%arg0: i32) -> (i32, i32) {
    %c0_i32 = arith.constant 0 : i32
    %c0_i32_0 = arith.constant 0 : i32
    %c0_i32_1 = arith.constant 0 : i32
    return %c0_i32, %c0_i32_0 : i32, i32
  }
  func.func @transform_3(%arg0: i32) -> (i32, i32) {
    %c0_i32 = arith.constant 0 : i32
    %c0_i32_0 = arith.constant 0 : i32
    %c0_i32_1 = arith.constant 0 : i32
    return %c0_i32, %c0_i32_0 : i32, i32
  }
  func.func @transform_4(%arg0: i32) -> (i32, i32) {
    %c0_i32 = arith.constant 0 : i32
    %c0_i32_0 = arith.constant 0 : i32
    %c0_i32_1 = arith.constant 0 : i32
    return %c0_i32, %c0_i32_0 : i32, i32
  }
  func.func @transform_5(%arg0: i32) -> (i32, i32) {
    %c0_i32 = arith.constant 0 : i32
    %c0_i32_0 = arith.constant 0 : i32
    %c0_i32_1 = arith.constant 0 : i32
    return %c0_i32, %c0_i32_0 : i32, i32
  }
  func.func @transform_6(%arg0: i32) -> (i32, i32) {
    %c0_i32 = arith.constant 0 : i32
    %c0_i32_0 = arith.constant 0 : i32
    %c0_i32_1 = arith.constant 0 : i32
    return %c0_i32, %c0_i32_0 : i32, i32
  }
  func.func @transform_7(%arg0: i32) -> (i32, i32) {
    %c0_i32 = arith.constant 0 : i32
    %c0_i32_0 = arith.constant 0 : i32
    return %c0_i32, %arg0 : i32, i32
  }
}

</mosaic_0001>

<bundles_post_ra>
// kernel: tpu_custom_call.1
= control target key start
LH: loop header
LB: loop body
LE: loop exit
PB: predicated region body
PF: predicated region fallthrough
CT: control target
= control target key end

     0   :  { %12 = vsyncpa [#allocation3], 0  ;;  %s609_s0 = inlined_call_operand.hbm [shape: f32[8,32], index: 0, kind: input, shape index: {}]   ;;  %s610_s1 = inlined_call_operand.hbm [shape: bf16[32,128], index: 1, kind: input, shape index: {}]   ;;  %s611_s2 = inlined_call_operand.vmem [shape: f32[1,128], index: 2, kind: input, shape index: {}]   ;;  %s612_s3 = inlined_call_operand.hbm [shape: bf16[128,128], index: 3, kind: input, shape index: {}]   ;;  %s613_s4 = inlined_call_operand.vmem [shape: f32[1,128], index: 4, kind: input, shape index: {}]   ;;  %s614_s5 = inlined_call_operand.vmem [shape: bf16[4,128], index: 5, kind: input, shape index: {}]   ;;  %s615_s6 = inlined_call_operand.vmem [shape: f32[4,1], index: 6, kind: input, shape index: {}]   ;;  %s616_s7 = inlined_call_operand.hbm [shape: f32[4,8], index: 7, kind: output, shape index: {}]  }
   0x1   :  { %13 = vsyncpa [#allocation6], 0 }
   0x2   :  { %14 = vsyncpa [#allocation4], 0  ;;  %s491_s24 = smov [#allocation5]   ;;  %s397_s28 = scalar_lea.hbm %s610_s1, 256 }
   0x3   :  { %s30_s25 = sshll.u32 %s491_s24, 4  ;;  %p398_p0 = scmp.ne.s32.totalorder %s610_s1, %s397_s28  ;;  %s31_s25 = int_to_ptr.vmem [resolvable:$true] %s30_s25 }
   0x4   :  { %p401_p1 = scmp.lt.u32.totalorder %s397_s28, %s610_s1 }
   0x6   :  { %p403_p2 = pnand %p401_p1, %p398_p0 }
   0x8   :  { %406 = shalt.err (!%p403_p2)
}
   0x9   :  { %s407_s10 = scalar_lea.vmem %s31_s25, 256  ;;  %p412_p4 = scmp.lt.s32.totalorder %s31_s25, %s31_s25 }
   0xa   :  { %p408_p3 = scmp.ne.s32.totalorder %s31_s25, %s407_s10  ;;  %p413_p5 = scmp.lt.s32.totalorder %s407_s10, %s407_s10 }
   0xc   :  { %p414_p6 = por %p413_p5, %p412_p4 }
   0xe   :  { %p415_p7 = pnand %p414_p6, %p408_p3 }
  0x10   :  { %418 = shalt.err (!%p415_p7)
}
  0x11   :  { %s492_s11 = smov 64   ;;  %s493_s12 = smov 4  }
  0x12   :  { %36 = dma.hbm_to_vmem [thread:$0]  %s610_s1, 256, %s31_s25, [#allocation6], %s492_s11, %s492_s11, %s493_s12  }
  0x13   :  { %s494_s15 = smov [#allocation2]   ;;  %s495_s17 = smov [#allocation7]  }
  0x14   :  { %s21_s16 = sshll.u32 %s494_s15, 4  ;;  %s44_s18 = sshll.u32 %s495_s17, 4  ;;  %s22_s16 = int_to_ptr.vmem [resolvable:$true] %s21_s16  ;;  %s45_s18 = int_to_ptr.vmem [resolvable:$true] %s44_s18 }
  0x15   :  { %s419_s21 = scalar_lea.hbm %s609_s0, 128 }
  0x16   :  { %p420_p8 = scmp.ne.s32.totalorder %s609_s0, %s419_s21  ;;  %p423_p9 = scmp.lt.u32.totalorder %s419_s21, %s609_s0 }
  0x18   :  { %p425_p10 = pnand %p423_p9, %p420_p8 }
  0x1a   :  { %428 = shalt.err (!%p425_p10)
}
  0x1b   :  { %s429_s1 = scalar_lea.vmem %s22_s16, 128  ;;  %p434_p12 = scmp.lt.s32.totalorder %s22_s16, %s22_s16 }
  0x1c   :  { %p430_p11 = scmp.ne.s32.totalorder %s22_s16, %s429_s1  ;;  %p435_p13 = scmp.lt.s32.totalorder %s429_s1, %s429_s1 }
  0x1e   :  { %p436_p0 = por %p435_p13, %p434_p12 }
  0x20   :  { %p437_p1 = pnand %p436_p0, %p430_p11 }
  0x22   :  { %440 = shalt.err (!%p437_p1)
}
  0x23   :  { %24 = dma.hbm_to_vmem [thread:$0]  %s609_s0, 128, %s22_s16, [#allocation3]  }
  0x24   :  { %s441_s30 = scalar_lea.hbm %s612_s3, 1024 }
  0x25   :  { %p442_p2 = scmp.ne.s32.totalorder %s612_s3, %s441_s30  ;;  %p445_p3 = scmp.lt.u32.totalorder %s441_s30, %s612_s3 }
  0x27   :  { %p447_p4 = pnand %p445_p3, %p442_p2 }
  0x29   :  { %450 = shalt.err (!%p447_p4)
}
  0x2a   :  { %s451_s14 = scalar_lea.vmem %s45_s18, 1024  ;;  %p456_p6 = scmp.lt.s32.totalorder %s45_s18, %s45_s18 }
  0x2b   :  { %p452_p5 = scmp.ne.s32.totalorder %s45_s18, %s451_s14  ;;  %p457_p7 = scmp.lt.s32.totalorder %s451_s14, %s451_s14 }
  0x2d   :  { %p458_p8 = por %p457_p7, %p456_p6 }
  0x2f   :  { %p459_p9 = pnand %p458_p8, %p452_p5 }
  0x31   :  { %462 = shalt.err (!%p459_p9)
}
  0x32   :  { %50 = dma.hbm_to_vmem [thread:$0]  %s612_s3, 1024, %s45_s18, [#allocation6], %s492_s11, %s492_s11, %s493_s12  }
  0x33   :  { %485 = dma.done.wait [#allocation3], 128  }
  0x34   :  { %486 = vsyncadd [#allocation3], 4294967168 }
  0x35   :  { %487 = dma.done.wait [#allocation6], 1280  }
  0x36   :  { %488 = vsyncadd [#allocation6], 4294966016  ;;  %v496_v0 = vmov 0.0   ;;  %vm497_vm0 = vmmov 0   ;;  %v387_v1 = vld [vmem:[#allocation5] sm:$0xff]   ;;  %v388_v2 = vld [vmem:[#allocation5 + $0x8] sm:$0xff]  }
  0x37   :  { %343 = vmatprep.subr.bf16.mxu0 %v496_v0  ;;  %347 = vmatprep.mubr.msk.bf16.mxu0 %vm497_vm0, %v496_v0  ;;  %v67_v3 = vld [vmem:[#allocation2] sm:$0xff]  ;;  %v389_v4 = vld [vmem:[#allocation7] sm:$0xff]   ;;  %vm92_vm1 = vcmask 261120   ;;  %v391_v7 = vld [vmem:[#allocation7 + $0x10] sm:$0xff]   ;;  %v498_v22 = vmov 0   ;;  %vm298_vm2 = vcmask 60416  }
  0x38   :  { %351 = vmatprep.subr.bf16.mxu1 %v496_v0  ;;  %367 = vmatprep.mubr.msk.bf16.mxu1 %vm497_vm0, %v496_v0  ;;  %v68_v5 = vpack.c.bf16 %v67_v3, %v67_v3  ;;  %v390_v6 = vld [vmem:[#allocation7 + $0x8] sm:$0xff]   ;;  %v392_v8 = vld [vmem:[#allocation7 + $0x18] sm:$0xff]   ;;  %v393_v9 = vld [vmem:[#allocation7 + $0x20] sm:$0xff]  }
  0x39   :  { %344 = vmatpush3.bf16.msra.mxu0 %v387_v1  ;;  %352 = vmatpush3.bf16.msra.mxu1 %v389_v4  ;;  %v394_v10 = vld [vmem:[#allocation7 + $0x28] sm:$0xff]   ;;  %v395_v11 = vld [vmem:[#allocation7 + $0x30] sm:$0xff]   ;;  %v396_v12 = vld [vmem:[#allocation7 + $0x38] sm:$0xff]  }
  0x3a   :  { %345 = vmatprep.subr.bf16.mxu0 %v496_v0  ;;  %353 = vmatprep.subr.bf16.mxu1 %v496_v0  ;;  %v316_v13 = vld [vmem:[%s611_s2] ss:$0 sm:$0xff] }
  0x3b   :  { %v252_v21 = vld [vmem:[%s615_s6] sm:$0xf]  ;;  %386 = vset.pattern.permute.xlu0 %v498_v22  ;;  %s499_s6 = smov [#allocation8]  }
  0x3c   :  { %255 = vperm.xlu0 %386, %v252_v21   ;;  %v320_v23 = vld [vmem:[%s613_s4] ss:$0 sm:$0xff]  ;;  %s306_s20 = sshll.u32 %s499_s6, 4  ;;  %s307_s20 = int_to_ptr.vmem [resolvable:$true] %s306_s20 }
  0x3d   :  { %346 = vmatpush3.bf16.msra.mxu0 %v388_v2  ;;  %354 = vmatpush3.bf16.msra.mxu1 %v390_v6  ;;  %v250_v31 = vld [vmem:[%s614_s5] sm:$0x3]  ;;  %s463_s4 = scalar_lea.vmem %s307_s20, 64  ;;  %p468_p11 = scmp.lt.s32.totalorder %s307_s20, %s307_s20 }
  0x3e   :  { %371 = vmatprep.subr.bf16.mxu0 %v496_v0  ;;  %355 = vmatprep.subr.bf16.mxu1 %v496_v0  ;;  %p464_p10 = scmp.ne.s32.totalorder %s307_s20, %s463_s4  ;;  %p469_p12 = scmp.lt.s32.totalorder %s463_s4, %s463_s4 }
  0x40   :  { %348 = vmatmul.mubr.msk.bf16.vlgmr.msra.gmra.mrb[0].mxu0 %vm92_vm1, %v68_v5  ;;  %p470_p13 = por %p469_p12, %p468_p11 }
  0x41   :  { %373 = vmatprep.mubr.msk.bf16.mxu0 %vm497_vm0, %v496_v0  ;;  %356 = vmatpush3.bf16.msra.mxu1 %v391_v7 }
  0x42   :  { %357 = vmatprep.subr.bf16.mxu1 %v496_v0  ;;  %p471_p0 = pnand %p470_p13, %p464_p10 }
  0x45   :  { %358 = vmatpush3.bf16.msra.mxu1 %v392_v8 }
  0x46   :  { %359 = vmatprep.subr.bf16.mxu1 %v496_v0 }
  0x49   :  { %360 = vmatpush3.bf16.msra.mxu1 %v393_v9 }
  0x4a   :  { %361 = vmatprep.subr.bf16.mxu1 %v496_v0 }
  0x4d   :  { %362 = vmatpush3.bf16.msra.mxu1 %v394_v10 }
  0x4e   :  { %363 = vmatprep.subr.bf16.mxu1 %v496_v0 }
  0x51   :  { %364 = vmatpush3.bf16.msra.mxu1 %v395_v11 }
  0x52   :  { %365 = vmatprep.subr.bf16.mxu1 %v496_v0 }
  0x55   :  { %366 = vmatpush3.bf16.msra.mxu1 %v396_v12 }
  0xbb   :  { %v256_v32 = vpop.permute.xlu0 %255 }
 0x113   :  { %v130_v14 = vpop.f32.mrb[0].mxu0 }
 0x114   :  { %v131_v15 = vadd.f32 %v316_v13, %v130_v14  ;;  %v349_v16 = vpop.f32.mrb[1].mxu0 }
 0x115   :  { %v133_v17 = vpop.f32.mrb[2].mxu0 }
 0x116   :  { %v136_v18 = vmax.f32 %v131_v15, 0.0  ;;  %v350_v19 = vpop.f32.mrb[3].mxu0 }
 0x118   :  { %v137_v20 = vpack.c.bf16 %v136_v18, %v136_v18 }
 0x11a   :  { %368 = vmatmul.mubr.bf16.vlgmr.msra.gmra.mrb[0].mxu1 %v137_v20 }
 0x1ed   :  { %v243_v24 = vpop.f32.mrb[0].mxu1 }
 0x1ee   :  { %v244_v25 = vadd.f32 %v320_v23, %v243_v24  ;;  %v369_v26 = vpop.f32.mrb[1].mxu1 }
 0x1ef   :  { %v246_v27 = vpop.f32.mrb[2].mxu1 }
 0x1f0   :  { %v249_v28 = vmax.f32 %v244_v25, 0.0  ;;  %v370_v29 = vpop.f32.mrb[3].mxu1 }
 0x1f2   :  { %v251_v30 = vpack.c.bf16 %v249_v28, %v249_v28 }
 0x1f4   :  { %372 = vmatpush3.bf16.xpose.msra.mxu0 %v251_v30 }
 0x1fb   :  { %374 = vmatmul.mubr.bf16.vlgmr.msra.gmra.mrb[4].mxu0 %v250_v31 }
 0x2ce   :  { %v292_v33 = vpop.f32.mrb[4].mxu0 }
 0x2cf   :  { %v293_v34 = vadd.f32 %v292_v33, %v256_v32  ;;  %v375_v35 = vpop.f32.mrb[5].mxu0 }
 0x2d0   :  { %v295_v36 = vpop.f32.mrb[6].mxu0 }
 0x2d1   :  { %v376_v37 = vpop.f32.mrb[7].mxu0  ;;  %299 = vst.msk [vmem:[#allocation8] sm:$0xf] %vm298_vm2, %v293_v34 }
 0x2d2   :  { %474 = shalt.err (!%p471_p0)
}
 0x2d3   :  { %s475_s22 = scalar_lea.hbm %s616_s7, 64 }
 0x2d4   :  { %p476_p1 = scmp.ne.s32.totalorder %s616_s7, %s475_s22  ;;  %p479_p2 = scmp.lt.u32.totalorder %s475_s22, %s616_s7 }
 0x2d6   :  { %p481_p3 = pnand %p479_p2, %p476_p1 }
 0x2d8   :  { %484 = shalt.err (!%p481_p3)
}
 0x2d9   :  { %309 = dma.vmem_to_hbm [thread:$0]  %s307_s20, 64, %s616_s7, [#allocation4]  }
 0x2da   :  { %489 = dma.done.wait [#allocation4], 64  }
 0x2db   :  { %490 = vsyncadd [#allocation4], 4294967232 }
 0x2dc   :  { %313 = vsyncpa [#allocation3], 1 }
 0x2dd   :  { %314 = vsyncpa [#allocation6], 1 }
 0x2de   :  { %315 = vsyncpa [#allocation4], 1 }

</bundles_post_ra>
